<compile_context>
chip_gen: v7x
topology: tpu7x:2x2x1
jax: 0.10.0
libtpu: 0.0.40
codegen_flags: <defaults>
</compile_context>

<pallas_src>
import jax
import jax.numpy as jnp
from jax import lax
from jax.experimental import pallas as pl
from jax.experimental.pallas import tpu as pltpu


def _round_up(x, m):
    return ((x + m - 1) // m) * m


def qnet_kernel(obs_ref, act_ref,
                wf_ref, bf_ref,
                w1f_ref, w1a_ref, b1_ref,
                w2_ref, b2_ref,
                w3_ref, b3_ref,
                q_ref):
    # TODO(synk): feature_extractor_fn is injected externally in the PyTorch
    # module; a deterministic Linear(obs_dim, hidden)+ReLU stand-in is used.
    cdt = wf_ref.dtype                      # compute dtype (bf16 or f32)
    obs = obs_ref[...].astype(cdt)
    act = act_ref[...].astype(cdt)

    # feature extractor stand-in
    feat = jnp.maximum(
        jnp.dot(obs, wf_ref[...], preferred_element_type=jnp.float32)
        + bf_ref[...], 0.0)

    # MLP layer 1 over torch.cat([feature, action], 1) (concat-free split).
    # TODO(synk): action matmul has K=n_act (tiny); acceptable while n_act < 8.
    h1 = jnp.maximum(
        jnp.dot(feat.astype(cdt), w1f_ref[...], preferred_element_type=jnp.float32)
        + jnp.dot(act, w1a_ref[...], preferred_element_type=jnp.float32)
        + b1_ref[...], 0.0)

    # MLP layer 2
    h2 = jnp.maximum(
        jnp.dot(h1.astype(cdt), w2_ref[...], preferred_element_type=jnp.float32)
        + b2_ref[...], 0.0)

    # Final fc as (1, Hp) . (TILE_B, Hp)^T -> lane-dense (1, TILE_B) row.
    q_row = lax.dot_general(
        w3_ref[...], h2.astype(cdt),
        dimension_numbers=(((1,), (1,)), ((), ())),
        preferred_element_type=jnp.float32)
    q_ref[...] = q_row + b3_ref[0]


def qnet_forward(obs, action, params, *, tile_b=256):
    """Fused QNet forward. Returns Q of shape (B,) in float32."""
    (wf, bf, w1f, w1a, b1, w2, b2, w3, b3) = params
    B, obs_dim = obs.shape
    n_act = action.shape[1]
    Hp = wf.shape[1]                         # padded hidden (multiple of 128)

    # Batch tiling (pad B up to a multiple of the tile).
    tile_b = min(tile_b, _round_up(B, 8))
    Bp = _round_up(B, tile_b)
    if Bp != B:
        obs = jnp.pad(obs, ((0, Bp - B), (0, 0)))
        action = jnp.pad(action, ((0, Bp - B), (0, 0)))
    num_tiles = Bp // tile_b

    def const_spec(shape):                   # VMEM-resident across grid steps
        return pl.BlockSpec(shape, lambda i: (0, 0))

    def nbytes(a):
        return int(a.size) * a.dtype.itemsize

    w_bytes = sum(nbytes(a) for a in (wf, bf, w1f, w1a, b1, w2, b2, w3, b3))
    cost = pl.CostEstimate(
        flops=2 * Bp * Hp * (obs_dim + n_act + 2 * Hp + 1),
        transcendentals=0,
        bytes_accessed=nbytes(obs) + nbytes(action) + w_bytes + Bp * 4,
    )

    q = pl.pallas_call(
        qnet_kernel,
        out_shape=jax.ShapeDtypeStruct((num_tiles, tile_b), jnp.float32),
        grid=(num_tiles,),
        in_specs=[
            pl.BlockSpec((tile_b, obs_dim), lambda i: (i, 0)),   # obs tile
            pl.BlockSpec((tile_b, n_act), lambda i: (i, 0)),     # action tile
            const_spec(wf.shape), const_spec(bf.shape),
            const_spec(w1f.shape), const_spec(w1a.shape), const_spec(b1.shape),
            const_spec(w2.shape), const_spec(b2.shape),
            const_spec(w3.shape),
            pl.BlockSpec(memory_space=pltpu.MemorySpace.SMEM),   # scalar b3
        ],
        out_specs=pl.BlockSpec((1, tile_b), lambda i: (i, 0)),   # lane-dense row
        compiler_params=pltpu.CompilerParams(
            dimension_semantics=("parallel",)),
        cost_estimate=cost,
    )(obs, action, wf, bf, w1f, w1a, b1, w2, b2, w3, b3)

    return q.reshape(-1)[:B]                 # matches .squeeze(-1) in torch


def init_params(key, obs_dim, n_act, hidden, *, pad_to=128,
                dtype=jnp.bfloat16):
    """PyTorch-style uniform(+/-1/sqrt(fan_in)) init, hidden padded to `pad_to`.

    Weights are stored in `dtype` (bf16 by default) with zero-padded rows/cols
    so that padded lanes stay exactly zero through every ReLU; biases stay f32.
    """
    Hp = _round_up(hidden, pad_to)
    ks = jax.random.split(key, 8)

    def uni(k, shape, fan_in):
        bound = 1.0 / (fan_in ** 0.5)
        return jax.random.uniform(k, shape, jnp.float32, -bound, bound)

    def pad_c(a):   # pad output (column) dim to Hp
        return jnp.pad(a, ((0, 0), (0, Hp - a.shape[1])))

    def pad_rc(a):  # pad both dims to Hp
        return jnp.pad(a, ((0, Hp - a.shape[0]), (0, Hp - a.shape[1])))

    # feature extractor stand-in: Linear(obs_dim, hidden)
    wf = pad_c(uni(ks[0], (obs_dim, hidden), obs_dim))
    bf = pad_c(uni(ks[1], (1, hidden), obs_dim))
    # mlp layer 1: Linear(hidden + n_act, hidden), split into feat/act parts
    w1 = uni(ks[2], (hidden + n_act, hidden), hidden + n_act)
    b1 = pad_c(uni(ks[3], (1, hidden), hidden + n_act))
    w1f = pad_rc(w1[:hidden])
    w1a = pad_c(w1[hidden:])
    # mlp layer 2: Linear(hidden, hidden)
    w2 = pad_rc(uni(ks[4], (hidden, hidden), hidden))
    b2 = pad_c(uni(ks[5], (1, hidden), hidden))
    # fc: Linear(hidden, 1), stored transposed as a (1, Hp) row
    w3 = pad_c(uni(ks[6], (1, hidden), hidden))
    b3 = uni(ks[7], (1,), hidden)            # scalar bias, f32, goes to SMEM

    cast = lambda a: a.astype(dtype)
    return (cast(wf), bf, cast(w1f), cast(w1a), b1, cast(w2), b2, cast(w3), b3)


def qnet_ref(obs, action, params):
    """Pure-JAX f32 reference on the same (padded) parameters."""
    wf, bf, w1f, w1a, b1, w2, b2, w3, b3 = [
        jnp.asarray(p, jnp.float32) for p in params]
    feat = jnp.maximum(obs @ wf + bf, 0.0)
    h1 = jnp.maximum(feat @ w1f + action @ w1a + b1, 0.0)
    h2 = jnp.maximum(h1 @ w2 + b2, 0.0)
    return jnp.sum(h2 * w3, axis=-1) + b3[0]


if __name__ == "__main__":
    B, OBS_DIM, N_ACT, HIDDEN = 8, 16, 4, 32

    key = jax.random.PRNGKey(0)
    k_obs, k_act, k_par = jax.random.split(key, 3)

    obs = jax.random.normal(k_obs, (B, OBS_DIM), jnp.float32)
    action = jax.random.normal(k_act, (B, N_ACT), jnp.float32)
    params = init_params(k_par, OBS_DIM, N_ACT, HIDDEN)

    q = qnet_forward(obs, action, params)
    q = jax.block_until_ready(q)

    q_expected = qnet_ref(obs, action, params)
    assert q.shape == (B,)
    # bf16 matmul inputs with f32 accumulation -> loose tolerance vs f32 ref.
    assert jnp.allclose(q, q_expected, atol=2e-2, rtol=2e-2), (q, q_expected)

    print("KERNEL_OK")
</pallas_src>

<mosaic_0001>
module attributes {stable_mosaic.version = 11 : i64} {
  func.func @qnet_kernel(%arg0: i32, %arg1: memref<8x16xf32, #tpu.memory_space<vmem>>, %arg2: memref<8x4xf32, #tpu.memory_space<vmem>>, %arg3: memref<16x128xbf16, #tpu.memory_space<vmem>>, %arg4: memref<1x128xf32, #tpu.memory_space<vmem>>, %arg5: memref<128x128xbf16, #tpu.memory_space<vmem>>, %arg6: memref<4x128xbf16, #tpu.memory_space<vmem>>, %arg7: memref<1x128xf32, #tpu.memory_space<vmem>>, %arg8: memref<128x128xbf16, #tpu.memory_space<vmem>>, %arg9: memref<1x128xf32, #tpu.memory_space<vmem>>, %arg10: memref<1x128xbf16, #tpu.memory_space<vmem>>, %arg11: memref<1xf32, #tpu.memory_space<smem>>, %arg12: memref<1x8xf32, #tpu.memory_space<vmem>>) attributes {dimension_semantics = [#tpu.dimension_semantics<parallel>], iteration_bounds = array<i64: 1>, scalar_prefetch = 0 : i64, scratch_operands = 0 : i64, tpu.core_type = #tpu.core_type<tc>, window_params = [{transform_indices = @transform_0, window_bounds = array<i64: 8, 16>}, {transform_indices = @transform_1, window_bounds = array<i64: 8, 4>}, {pipeline_mode = #tpu.pipeline_mode<synchronous>, transform_indices = @transform_2, window_bounds = array<i64: 16, 128>}, {pipeline_mode = #tpu.pipeline_mode<synchronous>, transform_indices = @transform_3, window_bounds = array<i64: 1, 128>}, {pipeline_mode = #tpu.pipeline_mode<synchronous>, transform_indices = @transform_4, window_bounds = array<i64: 128, 128>}, {pipeline_mode = #tpu.pipeline_mode<synchronous>, transform_indices = @transform_5, window_bounds = array<i64: 4, 128>}, {pipeline_mode = #tpu.pipeline_mode<synchronous>, transform_indices = @transform_6, window_bounds = array<i64: 1, 128>}, {pipeline_mode = #tpu.pipeline_mode<synchronous>, transform_indices = @transform_7, window_bounds = array<i64: 128, 128>}, {pipeline_mode = #tpu.pipeline_mode<synchronous>, transform_indices = @transform_8, window_bounds = array<i64: 1, 128>}, {pipeline_mode = #tpu.pipeline_mode<synchronous>, transform_indices = @transform_9, window_bounds = array<i64: 1, 128>}, {transform_indices = @transform_10, window_bounds = array<i64: 1>}, {transform_indices = @transform_11, window_bounds = array<i64: 1, 8>}]} {
    %c0 = arith.constant 0 : index
    %c0_0 = arith.constant 0 : index
    %0 = vector.load %arg1[%c0, %c0_0] : memref<8x16xf32, #tpu.memory_space<vmem>>, vector<8x16xf32>
    %1 = arith.truncf %0 : vector<8x16xf32> to vector<8x16xbf16>
    %c0_1 = arith.constant 0 : index
    %c0_2 = arith.constant 0 : index
    %2 = vector.load %arg2[%c0_1, %c0_2] : memref<8x4xf32, #tpu.memory_space<vmem>>, vector<8x4xf32>
    %3 = arith.truncf %2 : vector<8x4xf32> to vector<8x4xbf16>
    %c0_3 = arith.constant 0 : index
    %c0_4 = arith.constant 0 : index
    %4 = vector.load %arg3[%c0_3, %c0_4] : memref<16x128xbf16, #tpu.memory_space<vmem>>, vector<16x128xbf16>
    %cst = arith.constant dense<0.000000e+00> : vector<8x128xf32>
    %5 = tpu.matmul %1, %4, %cst {dimension_numbers = #tpu.dot_dimension_numbers<[1], [0], [0], [1], [0, 0, 1, 1], [], []>} : vector<8x16xbf16>, vector<16x128xbf16>, vector<8x128xf32> -> vector<8x128xf32>
    %c0_5 = arith.constant 0 : index
    %c0_6 = arith.constant 0 : index
    %6 = vector.load %arg4[%c0_5, %c0_6] : memref<1x128xf32, #tpu.memory_space<vmem>>, vector<1x128xf32>
    %7 = vector.broadcast %6 : vector<1x128xf32> to vector<8x128xf32>
    %8 = arith.addf %5, %7 : vector<8x128xf32>
    %cst_7 = arith.constant 0.000000e+00 : f32
    %9 = vector.broadcast %cst_7 : f32 to vector<8x128xf32>
    %10 = arith.maximumf %8, %9 : vector<8x128xf32>
    %11 = arith.truncf %10 : vector<8x128xf32> to vector<8x128xbf16>
    %c0_8 = arith.constant 0 : index
    %c0_9 = arith.constant 0 : index
    %12 = vector.load %arg5[%c0_8, %c0_9] : memref<128x128xbf16, #tpu.memory_space<vmem>>, vector<128x128xbf16>
    %cst_10 = arith.constant dense<0.000000e+00> : vector<8x128xf32>
    %13 = tpu.matmul %11, %12, %cst_10 {dimension_numbers = #tpu.dot_dimension_numbers<[1], [0], [0], [1], [0, 0, 1, 1], [], []>} : vector<8x128xbf16>, vector<128x128xbf16>, vector<8x128xf32> -> vector<8x128xf32>
    %c0_11 = arith.constant 0 : index
    %c0_12 = arith.constant 0 : index
    %14 = vector.load %arg6[%c0_11, %c0_12] : memref<4x128xbf16, #tpu.memory_space<vmem>>, vector<4x128xbf16>
    %cst_13 = arith.constant dense<0.000000e+00> : vector<8x128xf32>
    %15 = tpu.matmul %3, %14, %cst_13 {dimension_numbers = #tpu.dot_dimension_numbers<[1], [0], [0], [1], [0, 0, 1, 1], [], []>} : vector<8x4xbf16>, vector<4x128xbf16>, vector<8x128xf32> -> vector<8x128xf32>
    %16 = arith.addf %13, %15 : vector<8x128xf32>
    %c0_14 = arith.constant 0 : index
    %c0_15 = arith.constant 0 : index
    %17 = vector.load %arg7[%c0_14, %c0_15] : memref<1x128xf32, #tpu.memory_space<vmem>>, vector<1x128xf32>
    %18 = vector.broadcast %17 : vector<1x128xf32> to vector<8x128xf32>
    %19 = arith.addf %16, %18 : vector<8x128xf32>
    %cst_16 = arith.constant 0.000000e+00 : f32
    %20 = vector.broadcast %cst_16 : f32 to vector<8x128xf32>
    %21 = arith.maximumf %19, %20 : vector<8x128xf32>
    %22 = arith.truncf %21 : vector<8x128xf32> to vector<8x128xbf16>
    %c0_17 = arith.constant 0 : index
    %c0_18 = arith.constant 0 : index
    %23 = vector.load %arg8[%c0_17, %c0_18] : memref<128x128xbf16, #tpu.memory_space<vmem>>, vector<128x128xbf16>
    %cst_19 = arith.constant dense<0.000000e+00> : vector<8x128xf32>
    %24 = tpu.matmul %22, %23, %cst_19 {dimension_numbers = #tpu.dot_dimension_numbers<[1], [0], [0], [1], [0, 0, 1, 1], [], []>} : vector<8x128xbf16>, vector<128x128xbf16>, vector<8x128xf32> -> vector<8x128xf32>
    %c0_20 = arith.constant 0 : index
    %c0_21 = arith.constant 0 : index
    %25 = vector.load %arg9[%c0_20, %c0_21] : memref<1x128xf32, #tpu.memory_space<vmem>>, vector<1x128xf32>
    %26 = vector.broadcast %25 : vector<1x128xf32> to vector<8x128xf32>
    %27 = arith.addf %24, %26 : vector<8x128xf32>
    %cst_22 = arith.constant 0.000000e+00 : f32
    %28 = vector.broadcast %cst_22 : f32 to vector<8x128xf32>
    %29 = arith.maximumf %27, %28 : vector<8x128xf32>
    %c0_23 = arith.constant 0 : index
    %c0_24 = arith.constant 0 : index
    %30 = vector.load %arg10[%c0_23, %c0_24] : memref<1x128xbf16, #tpu.memory_space<vmem>>, vector<1x128xbf16>
    %31 = arith.truncf %29 : vector<8x128xf32> to vector<8x128xbf16>
    %cst_25 = arith.constant dense<0.000000e+00> : vector<1x8xf32>
    %32 = tpu.matmul %30, %31, %cst_25 {dimension_numbers = #tpu.dot_dimension_numbers<[1], [1], [0], [0], [0, 0, 1, 0], [], []>} : vector<1x128xbf16>, vector<8x128xbf16>, vector<1x8xf32> -> vector<1x8xf32>
    %c0_26 = arith.constant 0 : index
    %33 = memref.load %arg11[%c0_26] : memref<1xf32, #tpu.memory_space<smem>>
    %34 = vector.broadcast %33 : f32 to vector<1x8xf32>
    %35 = arith.addf %32, %34 : vector<1x8xf32>
    %c0_27 = arith.constant 0 : index
    %c0_28 = arith.constant 0 : index
    %36 = vector.load %arg12[%c0_27, %c0_28] : memref<1x8xf32, #tpu.memory_space<vmem>>, vector<1x8xf32>
    tpu.vector_store %arg12[%c0_27, %c0_28], %35 {strides = array<i32>} : memref<1x8xf32, #tpu.memory_space<vmem>>, vector<1x8xf32>,
    return
  }
  func.func @transform_0(%arg0: i32) -> (i32, i32) {
    %c0_i32 = arith.constant 0 : i32
    %c0_i32_0 = arith.constant 0 : i32
    return %arg0, %c0_i32 : i32, i32
  }
  func.func @transform_1(%arg0: i32) -> (i32, i32) {
    %c0_i32 = arith.constant 0 : i32
    %c0_i32_0 = arith.constant 0 : i32
    return %arg0, %c0_i32 : i32, i32
  }
  func.func @transform_2(%arg0: i32) -> (i32, i32) {
    %c0_i32 = arith.constant 0 : i32
    %c0_i32_0 = arith.constant 0 : i32
    %c0_i32_1 = arith.constant 0 : i32
    return %c0_i32, %c0_i32_0 : i32, i32
  }
  func.func @transform_3(%arg0: i32) -> (i32, i32) {
    %c0_i32 = arith.constant 0 : i32
    %c0_i32_0 = arith.constant 0 : i32
    %c0_i32_1 = arith.constant 0 : i32
    return %c0_i32, %c0_i32_0 : i32, i32
  }
  func.func @transform_4(%arg0: i32) -> (i32, i32) {
    %c0_i32 = arith.constant 0 : i32
    %c0_i32_0 = arith.constant 0 : i32
    %c0_i32_1 = arith.constant 0 : i32
    return %c0_i32, %c0_i32_0 : i32, i32
  }
  func.func @transform_5(%arg0: i32) -> (i32, i32) {
    %c0_i32 = arith.constant 0 : i32
    %c0_i32_0 = arith.constant 0 : i32
    %c0_i32_1 = arith.constant 0 : i32
    return %c0_i32, %c0_i32_0 : i32, i32
  }
  func.func @transform_6(%arg0: i32) -> (i32, i32) {
    %c0_i32 = arith.constant 0 : i32
    %c0_i32_0 = arith.constant 0 : i32
    %c0_i32_1 = arith.constant 0 : i32
    return %c0_i32, %c0_i32_0 : i32, i32
  }
  func.func @transform_7(%arg0: i32) -> (i32, i32) {
    %c0_i32 = arith.constant 0 : i32
    %c0_i32_0 = arith.constant 0 : i32
    %c0_i32_1 = arith.constant 0 : i32
    return %c0_i32, %c0_i32_0 : i32, i32
  }
  func.func @transform_8(%arg0: i32) -> (i32, i32) {
    %c0_i32 = arith.constant 0 : i32
    %c0_i32_0 = arith.constant 0 : i32
    %c0_i32_1 = arith.constant 0 : i32
    return %c0_i32, %c0_i32_0 : i32, i32
  }
  func.func @transform_9(%arg0: i32) -> (i32, i32) {
    %c0_i32 = arith.constant 0 : i32
    %c0_i32_0 = arith.constant 0 : i32
    %c0_i32_1 = arith.constant 0 : i32
    return %c0_i32, %c0_i32_0 : i32, i32
  }
  func.func @transform_10(%arg0: i32) -> i32 {
    %c0_i32 = arith.constant 0 : i32
    %c0_i32_0 = arith.constant 0 : i32
    return %c0_i32 : i32
  }
  func.func @transform_11(%arg0: i32) -> (i32, i32) {
    %c0_i32 = arith.constant 0 : i32
    %c0_i32_0 = arith.constant 0 : i32
    return %arg0, %c0_i32 : i32, i32
  }
}

</mosaic_0001>

<bundles_post_ra>
// kernel: tpu_custom_call.1
= control target key start
LH: loop header
LB: loop body
LE: loop exit
PB: predicated region body
PF: predicated region fallthrough
CT: control target
= control target key end

     0   :  { %17 = vsyncpa [#allocation4], 0  ;;  %s830_s0 = inlined_call_operand.vmem [shape: f32[8,16], index: 0, kind: input, shape index: {}]   ;;  %s831_s1 = inlined_call_operand.vmem [shape: f32[8,4], index: 1, kind: input, shape index: {}]   ;;  %s832_s2 = inlined_call_operand.vmem [shape: bf16[16,128], index: 2, kind: input, shape index: {}]   ;;  %s833_s3 = inlined_call_operand.vmem [shape: f32[1,128], index: 3, kind: input, shape index: {}]   ;;  %s834_s4 = inlined_call_operand.hbm [shape: bf16[128,128], index: 4, kind: input, shape index: {}]   ;;  %s835_s5 = inlined_call_operand.vmem [shape: bf16[4,128], index: 5, kind: input, shape index: {}]   ;;  %s836_s6 = inlined_call_operand.vmem [shape: f32[1,128], index: 6, kind: input, shape index: {}]   ;;  %s837_s7 = inlined_call_operand.hbm [shape: bf16[128,128], index: 7, kind: input, shape index: {}]   ;;  %s838_s8 = inlined_call_operand.vmem [shape: f32[1,128], index: 8, kind: input, shape index: {}]   ;;  %s839_s9 = inlined_call_operand.vmem [shape: bf16[1,128], index: 9, kind: input, shape index: {}]   ;;  %s840_s10 = inlined_call_operand.<no memory space> [shape: f32[1], index: 10, kind: input, shape index: {}]   ;;  %s841_s11 = inlined_call_operand.hbm [shape: f32[1,8], index: 11, kind: output, shape index: {}]  }
   0x1   :  { %18 = vsyncpa [#allocation7], 0 }
   0x2   :  { %19 = vsyncpa [#allocation5], 0  ;;  %s671_s17 = smov [#allocation3]   ;;  %s599_s21 = scalar_lea.hbm %s834_s4, 1024 }
   0x3   :  { %s33_s18 = sshll.u32 %s671_s17, 4  ;;  %p600_p0 = scmp.ne.s32.totalorder %s834_s4, %s599_s21  ;;  %s34_s18 = int_to_ptr.vmem [resolvable:$true] %s33_s18 }
   0x4   :  { %p603_p1 = scmp.lt.u32.totalorder %s599_s21, %s834_s4 }
   0x6   :  { %p605_p2 = pnand %p603_p1, %p600_p0 }
   0x8   :  { %608 = shalt.err (!%p605_p2)
}
   0x9   :  { %s609_s26 = scalar_lea.vmem %s34_s18, 1024  ;;  %p614_p4 = scmp.lt.s32.totalorder %s34_s18, %s34_s18 }
   0xa   :  { %p610_p3 = scmp.ne.s32.totalorder %s34_s18, %s609_s26  ;;  %p615_p5 = scmp.lt.s32.totalorder %s609_s26, %s609_s26 }
   0xc   :  { %p616_p6 = por %p615_p5, %p614_p4 }
   0xe   :  { %p617_p7 = pnand %p616_p6, %p610_p3 }
  0x10   :  { %620 = shalt.err (!%p617_p7)
}
  0x11   :  { %s672_s27 = smov 64   ;;  %s673_s28 = smov 4  }
  0x12   :  { %39 = dma.hbm_to_vmem [thread:$0]  %s834_s4, 1024, %s34_s18, [#allocation4], %s672_s27, %s672_s27, %s673_s28  }
  0x13   :  { %s674_s12 = smov [#allocation6]   ;;  %s621_s16 = scalar_lea.hbm %s837_s7, 1024 }
  0x14   :  { %s49_s13 = sshll.u32 %s674_s12, 4  ;;  %p622_p8 = scmp.ne.s32.totalorder %s837_s7, %s621_s16  ;;  %s50_s13 = int_to_ptr.vmem [resolvable:$true] %s49_s13 }
  0x15   :  { %p625_p9 = scmp.lt.u32.totalorder %s621_s16, %s837_s7 }
  0x17   :  { %p627_p10 = pnand %p625_p9, %p622_p8 }
  0x19   :  { %630 = shalt.err (!%p627_p10)
}
  0x1a   :  { %s631_s22 = scalar_lea.vmem %s50_s13, 1024  ;;  %p636_p12 = scmp.lt.s32.totalorder %s50_s13, %s50_s13 }
  0x1b   :  { %p632_p11 = scmp.ne.s32.totalorder %s50_s13, %s631_s22  ;;  %p637_p13 = scmp.lt.s32.totalorder %s631_s22, %s631_s22 }
  0x1d   :  { %p638_p0 = por %p637_p13, %p636_p12 }
  0x1f   :  { %p639_p1 = pnand %p638_p0, %p632_p11 }
  0x21   :  { %642 = shalt.err (!%p639_p1)
}
  0x22   :  { %55 = dma.hbm_to_vmem [thread:$0]  %s837_s7, 1024, %s50_s13, [#allocation7], %s672_s27, %s672_s27, %s673_s28  }
  0x23   :  { %665 = dma.done.wait [#allocation4], 1024  }
  0x24   :  { %666 = vsyncadd [#allocation4], 4294966272 }
  0x25   :  { %667 = dma.done.wait [#allocation7], 1024  }
  0x26   :  { %668 = vsyncadd [#allocation7], 4294966272  ;;  %v675_v0 = vmov 0.0   ;;  %vm676_vm0 = vmmov 0   ;;  %v582_v1 = vld [vmem:[%s832_s2] sm:$0xff]   ;;  %vm88_vm1 = vcmask 130048   ;;  %v412_v54 = vstv %s840_s10 }
  0x27   :  { %517 = vmatprep.subr.bf16.mxu0 %v675_v0  ;;  %519 = vmatprep.mubr.msk.bf16.mxu0 %vm676_vm0, %v675_v0  ;;  %v69_v2 = vld [vmem:[%s830_s0] sm:$0xff]  ;;  %v584_v5 = vld [vmem:[#allocation3 + $0x8] sm:$0xff]   ;;  %v585_v6 = vld [vmem:[#allocation3 + $0x10] sm:$0xff]   ;;  %vm155_vm2 = vcmask 1041408   ;;  %vm151_vm3 = vcmask 31744   ;;  %s677_s15 = smov [#allocation8]  }
  0x28   :  { %523 = vmatprep.subr.bf16.mxu1 %v675_v0  ;;  %525 = vmatprep.mubr.msk.bf16.mxu1 %vm676_vm0, %v675_v0  ;;  %v70_v3 = vpack.c.bf16 %v69_v2, %v69_v2  ;;  %v583_v4 = vld [vmem:[#allocation3] sm:$0xff]   ;;  %v586_v7 = vld [vmem:[#allocation3 + $0x18] sm:$0xff]   ;;  %v588_v9 = vld [vmem:[#allocation3 + $0x28] sm:$0xff]   ;;  %s461_s16 = sshll.u32 %s677_s15, 4  ;;  %vm453_vm4 = vcmask 57344   ;;  %s462_s16 = int_to_ptr.vmem [resolvable:$true] %s461_s16 }
  0x29   :  { %518 = vmatpush3.bf16.msra.mxu0 %v582_v1  ;;  %v587_v8 = vld [vmem:[#allocation3 + $0x20] sm:$0xff]   ;;  %v589_v10 = vld [vmem:[#allocation3 + $0x30] sm:$0xff]   ;;  %v590_v15 = vld [vmem:[#allocation3 + $0x38] sm:$0xff]   ;;  %s647_s17 = scalar_lea.vmem %s462_s16, 32  ;;  %p648_p3 = scmp.lt.s32.totalorder %s462_s16, %s462_s16 }
  0x2a   :  { %529 = vmatprep.subr.bf16.mxu0 %v675_v0  ;;  %v150_v11 = vld [vmem:[%s835_s5] sm:$0x3]  ;;  %v592_v17 = vld [vmem:[#allocation6 + $0x8] sm:$0xff]   ;;  %v593_v18 = vld [vmem:[#allocation6 + $0x10] sm:$0xff]  }
  0x2b   :  { %v157_v12 = vsel %vm155_vm2, %v150_v11, 0  ;;  %v71_v13 = vld [vmem:[%s831_s1] sm:$0xff]  ;;  %v594_v19 = vld [vmem:[#allocation6 + $0x18] sm:$0xff]   ;;  %v596_v21 = vld [vmem:[#allocation6 + $0x28] sm:$0xff]  }
  0x2c   :  { %520 = vmatmul.mubr.msk.bf16.vlgmr.msra.gmra.mrb[0].mxu0 %vm88_vm1, %v70_v3  ;;  %524 = vmatpush3.bf16.msra.mxu1 %v157_v12  ;;  %v72_v14 = vpack.c.bf16 %v71_v13, %v71_v13  ;;  %v591_v16 = vld [vmem:[#allocation6] sm:$0xff]   ;;  %v597_v34 = vld [vmem:[#allocation6 + $0x30] sm:$0xff]   ;;  %v598_v35 = vld [vmem:[#allocation6 + $0x38] sm:$0xff]  }
  0x2d   :  { %530 = vmatpush3.bf16.msra.mxu0 %v583_v4  ;;  %545 = vmatprep.mubr.msk.bf16.mxu0 %vm676_vm0, %v675_v0  ;;  %v595_v20 = vld [vmem:[#allocation6 + $0x20] sm:$0xff]  }
  0x2e   :  { %531 = vmatprep.subr.bf16.mxu0 %v675_v0  ;;  %549 = vmatprep.subr.bf16.mxu1 %v675_v0  ;;  %v471_v22 = vld [vmem:[%s833_s3] ss:$0 sm:$0xff] }
  0x2f   :  { %526 = vmatmul.mubr.msk.bf16.vlgmr.msra.gmra.mrb[0].mxu1 %vm151_vm3, %v72_v14  ;;  %v483_v37 = vld [vmem:[%s836_s6] ss:$0 sm:$0xff] }
  0x30   :  { %565 = vmatprep.mubr.msk.bf16.mxu1 %vm676_vm0, %v675_v0  ;;  %550 = vmatpush3.bf16.msra.mxu1 %v591_v16  ;;  %v484_v45 = vld [vmem:[%s838_s8] ss:$0 sm:$0xff]  ;;  %s643_s8 = scalar_lea.vmem %s462_s16, 16 }
  0x31   :  { %532 = vmatpush3.bf16.msra.mxu0 %v584_v5  ;;  %551 = vmatprep.subr.bf16.mxu1 %v675_v0  ;;  %v409_v53 = vld [vmem:[%s839_s9] sm:$0x1]  ;;  %p644_p2 = scmp.ne.s32.totalorder %s462_s16, %s643_s8  ;;  %p649_p4 = scmp.lt.s32.totalorder %s647_s17, %s643_s8 }
  0x32   :  { %533 = vmatprep.subr.bf16.mxu0 %v675_v0 }
  0x33   :  { %p650_p5 = por %p649_p4, %p648_p3 }
  0x34   :  { %552 = vmatpush3.bf16.msra.mxu1 %v592_v17 }
  0x35   :  { %534 = vmatpush3.bf16.msra.mxu0 %v585_v6  ;;  %553 = vmatprep.subr.bf16.mxu1 %v675_v0  ;;  %p651_p6 = pnand %p650_p5, %p644_p2 }
  0x36   :  { %535 = vmatprep.subr.bf16.mxu0 %v675_v0 }
  0x38   :  { %554 = vmatpush3.bf16.msra.mxu1 %v593_v18 }
  0x39   :  { %536 = vmatpush3.bf16.msra.mxu0 %v586_v7  ;;  %555 = vmatprep.subr.bf16.mxu1 %v675_v0 }
  0x3a   :  { %537 = vmatprep.subr.bf16.mxu0 %v675_v0 }
  0x3c   :  { %556 = vmatpush3.bf16.msra.mxu1 %v594_v19 }
  0x3d   :  { %538 = vmatpush3.bf16.msra.mxu0 %v587_v8  ;;  %557 = vmatprep.subr.bf16.mxu1 %v675_v0 }
  0x3e   :  { %539 = vmatprep.subr.bf16.mxu0 %v675_v0 }
  0x40   :  { %558 = vmatpush3.bf16.msra.mxu1 %v595_v20 }
  0x41   :  { %540 = vmatpush3.bf16.msra.mxu0 %v588_v9  ;;  %559 = vmatprep.subr.bf16.mxu1 %v675_v0 }
  0x42   :  { %541 = vmatprep.subr.bf16.mxu0 %v675_v0 }
  0x44   :  { %560 = vmatpush3.bf16.msra.mxu1 %v596_v21 }
  0x45   :  { %542 = vmatpush3.bf16.msra.mxu0 %v589_v10  ;;  %561 = vmatprep.subr.bf16.mxu1 %v675_v0 }
  0x46   :  { %543 = vmatprep.subr.bf16.mxu0 %v675_v0 }
  0x48   :  { %562 = vmatpush3.bf16.msra.mxu1 %v597_v34 }
  0x49   :  { %544 = vmatpush3.bf16.msra.mxu0 %v590_v15  ;;  %563 = vmatprep.subr.bf16.mxu1 %v675_v0 }
  0x4a   :  { %569 = vmatprep.subr.bf16.mxu0 %v675_v0 }
  0x4c   :  { %564 = vmatpush3.bf16.msra.mxu1 %v598_v35 }
  0xff   :  { %v126_v23 = vpop.f32.mrb[0].mxu0 }
 0x100   :  { %v127_v24 = vadd.f32 %v471_v22, %v126_v23  ;;  %v521_v25 = vpop.f32.mrb[1].mxu0 }
 0x101   :  { %v129_v26 = vpop.f32.mrb[2].mxu0 }
 0x102   :  { %v132_v27 = vmax.f32 %v127_v24, 0.0  ;;  %v522_v28 = vpop.f32.mrb[3].mxu0  ;;  %v193_v30 = vpop.f32.mrb[0].mxu1 }
 0x103   :  { %v527_v31 = vpop.f32.mrb[1].mxu1 }
 0x104   :  { %v133_v29 = vpack.c.bf16 %v132_v27, %v132_v27  ;;  %v196_v32 = vpop.f32.mrb[2].mxu1 }
 0x105   :  { %v528_v33 = vpop.f32.mrb[3].mxu1 }
 0x106   :  { %546 = vmatmul.mubr.bf16.vlgmr.msra.gmra.mrb[4].mxu0 %v133_v29 }
 0x107   :  { %571 = vmatprep.mubr.msk.bf16.mxu0 %vm676_vm0, %v675_v0 }
 0x1d9   :  { %v281_v36 = vpop.f32.mrb[4].mxu0 }
 0x1da   :  { %v282_v38 = vadd.f32 %v281_v36, %v193_v30  ;;  %v547_v39 = vpop.f32.mrb[5].mxu0 }
 0x1db   :  { %v284_v40 = vpop.f32.mrb[6].mxu0 }
 0x1dc   :  { %v294_v41 = vadd.f32 %v483_v37, %v282_v38  ;;  %v548_v42 = vpop.f32.mrb[7].mxu0 }
 0x1de   :  { %v295_v43 = vmax.f32 %v294_v41, 0.0 }
 0x1e0   :  { %v296_v44 = vpack.c.bf16 %v295_v43, %v295_v43 }
 0x1e2   :  { %566 = vmatmul.mubr.bf16.vlgmr.msra.gmra.mrb[4].mxu1 %v296_v44 }
 0x2b5   :  { %v402_v46 = vpop.f32.mrb[4].mxu1 }
 0x2b6   :  { %v403_v47 = vadd.f32 %v484_v45, %v402_v46  ;;  %v567_v48 = vpop.f32.mrb[5].mxu1 }
 0x2b7   :  { %v405_v49 = vpop.f32.mrb[6].mxu1 }
 0x2b8   :  { %v408_v50 = vmax.f32 %v403_v47, 0.0  ;;  %v568_v51 = vpop.f32.mrb[7].mxu1 }
 0x2ba   :  { %v410_v52 = vpack.c.bf16 %v408_v50, %v408_v50 }
 0x2bc   :  { %570 = vmatpush3.bf16.xpose.msra.mxu0 %v410_v52 }
 0x2c3   :  { %572 = vmatmul.mubr.bf16.vlgmr.msra.gmra.mrb[8].mxu0 %v409_v53 }
 0x396   :  { %v447_v55 = vpop.f32.mrb[8].mxu0 }
 0x397   :  { %v448_v56 = vadd.f32 %v447_v55, %v412_v54  ;;  %v573_v57 = vpop.f32.mrb[9].mxu0 }
 0x398   :  { %v450_v58 = vpop.f32.mrb[10].mxu0 }
 0x399   :  { %v574_v59 = vpop.f32.mrb[11].mxu0  ;;  %454 = vst.msk [vmem:[#allocation8] sm:$0x1] %vm453_vm4, %v448_v56 }
 0x39a   :  { %654 = shalt.err (!%p651_p6)
}
 0x39b   :  { %s655_s19 = scalar_lea.hbm %s841_s11, 16 }
 0x39c   :  { %p656_p7 = scmp.ne.s32.totalorder %s841_s11, %s655_s19  ;;  %p659_p8 = scmp.lt.u32.totalorder %s655_s19, %s841_s11 }
 0x39e   :  { %p661_p9 = pnand %p659_p8, %p656_p7 }
 0x3a0   :  { %664 = shalt.err (!%p661_p9)
}
 0x3a1   :  { %464 = dma.vmem_to_hbm [thread:$0]  %s462_s16, 16, %s841_s11, [#allocation5]  }
 0x3a2   :  { %669 = dma.done.wait [#allocation5], 16  }
 0x3a3   :  { %670 = vsyncadd [#allocation5], 4294967280 }
 0x3a4   :  { %468 = vsyncpa [#allocation4], 1 }
 0x3a5   :  { %469 = vsyncpa [#allocation7], 1 }
 0x3a6   :  { %470 = vsyncpa [#allocation5], 1 }

</bundles_post_ra>
